<compile_context>
chip_gen: v6e
topology: v6e:2x2x1
jax: 0.10.0
libtpu: 0.0.40
codegen_flags: <defaults>
</compile_context>

<pallas_src>
import jax
import jax.numpy as jnp
from jax.experimental import pallas as pl
from jax.experimental.pallas import tpu as pltpu


def _attention_kernel(g_ref, x_ref, wg_ref, wx_ref, sgx_ref, wp_ref, sp_ref,
                      o_ref):
    # g_ref: (1, F_g, TM)  x_ref: (1, F_l, TM)   -- pixel-last, lane-dense
    # wg_ref: (F_int, F_g) wx_ref: (F_int, F_l)  -- BN scale already folded in
    # sgx_ref: (F_int, 1)  wp_ref: (1, F_int)    sp_ref: SMEM (1,)
    g = g_ref[0].astype(jnp.float32)              # (F_g, TM)
    x = x_ref[0].astype(jnp.float32)              # (F_l, TM)

    # fused 1x1 convs + eval-mode BN (scale folded into weights, shifts summed)
    h = (jnp.dot(wg_ref[...], g, preferred_element_type=jnp.float32)
         + jnp.dot(wx_ref[...], x, preferred_element_type=jnp.float32)
         + sgx_ref[...])
    h = jnp.maximum(h, 0.0)                       # (F_int, TM)

    # psi branch: F_int -> 1, BN folded, sigmoid
    p = jnp.dot(wp_ref[...], h, preferred_element_type=jnp.float32) + sp_ref[0]
    p = 1.0 / (1.0 + jnp.exp(-p))                 # (1, TM); exp goes to EUP

    # gate the skip connection
    o_ref[0] = (x * p).astype(o_ref.dtype)        # (F_l, TM), lane-dense store


def attention_block_pallas(g, x, params, *, tile_m=512):
    """g, x: NCHW float32 arrays.  Returns NCHW gated x."""
    N, F_g, H, W = g.shape
    _, F_l, _, _ = x.shape
    F_int = params["wg_t"].shape[0]
    P = H * W

    # NCHW -> (N, C, P): pure reshape, spatial already contiguous & last.
    g3 = g.reshape(N, F_g, P)
    x3 = x.reshape(N, F_l, P)

    # Pixel tile: multiple of 128, clamped to the (128-aligned) pixel count so
    # small feature maps don't over-pad; pad P up to a multiple of the tile.
    p_aligned = ((P + 127) // 128) * 128
    tm = max(128, min(int(tile_m), p_aligned))
    tm = ((tm + 127) // 128) * 128
    P_pad = ((P + tm - 1) // tm) * tm
    if P_pad != P:
        pad = ((0, 0), (0, 0), (0, P_pad - P))
        g3 = jnp.pad(g3, pad)
        x3 = jnp.pad(x3, pad)   # zero-padded pixels -> out = 0 there, sliced off

    grid = (N, P_pad // tm)

    def pix_spec(c):
        return pl.BlockSpec((1, c, tm), lambda n, i: (n, 0, i))

    def weight_spec(shape):
        return pl.BlockSpec(shape, lambda n, i: (0, 0))

    # mem-bound custom call: tell XLA so it schedules neighbors sensibly
    bytes_accessed = 4 * N * P_pad * (F_g + 2 * F_l)
    flops = 2 * N * P_pad * F_int * (F_g + F_l + 1) + 8 * N * P_pad
    cost = pl.CostEstimate(flops=flops,
                           transcendentals=N * P_pad,
                           bytes_accessed=bytes_accessed)

    out3 = pl.pallas_call(
        _attention_kernel,
        out_shape=jax.ShapeDtypeStruct((N, F_l, P_pad), x.dtype),
        grid_spec=pltpu.PrefetchScalarGridSpec(
            num_scalar_prefetch=0,
            grid=grid,
            in_specs=[
                pix_spec(F_g),                              # g   (1,F_g,TM)
                pix_spec(F_l),                              # x   (1,F_l,TM)
                weight_spec((F_int, F_g)),                  # wg_t (scale folded)
                weight_spec((F_int, F_l)),                  # wx_t (scale folded)
                weight_spec((F_int, 1)),                    # shift_g + shift_x
                weight_spec((1, F_int)),                    # wpsi_t (scale folded)
                pl.BlockSpec(memory_space=pltpu.MemorySpace.SMEM),  # shift_psi
            ],
            out_specs=pix_spec(F_l),
        ),
        compiler_params=pltpu.CompilerParams(
            dimension_semantics=("parallel", "parallel")),
        cost_estimate=cost,
    )(g3, x3,
      params["wg_t"], params["wx_t"], params["shift_gx"],
      params["wpsi_t"], params["shift_psi"])

    if P_pad != P:
        out3 = out3[:, :, :P]
    return out3.reshape(N, F_l, H, W)


# ----------------------------------------------------------------------------
# Parameter construction (raw conv + BatchNorm params) and offline folding.
# ----------------------------------------------------------------------------
def make_raw_params(key, F_g, F_l, F_int):
    ks = jax.random.split(key, 18)

    def normal(k, shape, s=1.0):
        return s * jax.random.normal(k, shape, jnp.float32)

    return dict(
        # W_g branch: Conv2d(F_g -> F_int, 1x1) + BatchNorm2d(F_int)
        wg=normal(ks[0], (F_int, F_g), 0.2), bg=normal(ks[1], (F_int,), 0.1),
        gamma_g=1.0 + normal(ks[2], (F_int,), 0.1),
        beta_g=normal(ks[3], (F_int,), 0.1),
        mean_g=normal(ks[4], (F_int,), 0.1),
        var_g=0.5 + jnp.abs(normal(ks[5], (F_int,), 0.5)),
        # W_x branch: Conv2d(F_l -> F_int, 1x1) + BatchNorm2d(F_int)
        wx=normal(ks[6], (F_int, F_l), 0.2), bx=normal(ks[7], (F_int,), 0.1),
        gamma_x=1.0 + normal(ks[8], (F_int,), 0.1),
        beta_x=normal(ks[9], (F_int,), 0.1),
        mean_x=normal(ks[10], (F_int,), 0.1),
        var_x=0.5 + jnp.abs(normal(ks[11], (F_int,), 0.5)),
        # psi branch: Conv2d(F_int -> 1, 1x1) + BatchNorm2d(1) + Sigmoid
        wpsi=normal(ks[12], (1, F_int), 0.2), bpsi=normal(ks[13], (1,), 0.1),
        gamma_p=1.0 + normal(ks[14], (1,), 0.1),
        beta_p=normal(ks[15], (1,), 0.1),
        mean_p=normal(ks[16], (1,), 0.1),
        var_p=0.5 + jnp.abs(normal(ks[17], (1,), 0.5)),
    )


def fold_params(raw, eps=1e-5):
    """Fold (conv bias + eval-mode BN) into the conv weights / a single shift."""
    def fold(w, b, gamma, beta, mean, var):
        scale = gamma / jnp.sqrt(var + eps)          # per output channel
        return w * scale[:, None], (b - mean) * scale + beta

    wg_t, shift_g = fold(raw["wg"], raw["bg"], raw["gamma_g"], raw["beta_g"],
                         raw["mean_g"], raw["var_g"])
    wx_t, shift_x = fold(raw["wx"], raw["bx"], raw["gamma_x"], raw["beta_x"],
                         raw["mean_x"], raw["var_x"])
    wpsi_t, shift_p = fold(raw["wpsi"], raw["bpsi"], raw["gamma_p"],
                           raw["beta_p"], raw["mean_p"], raw["var_p"])
    return dict(
        wg_t=wg_t,                                  # (F_int, F_g)
        wx_t=wx_t,                                  # (F_int, F_l)
        shift_gx=(shift_g + shift_x)[:, None],      # (F_int, 1)
        wpsi_t=wpsi_t,                              # (1, F_int)
        shift_psi=shift_p,                          # (1,)  -> SMEM
    )


def attention_block_ref(g, x, raw, eps=1e-5):
    """Plain-JAX reference with UNFOLDED conv + BatchNorm (eval) math."""
    def conv_bn(t, w, b, gamma, beta, mean, var):
        y = jnp.einsum('oc,nchw->nohw', w, t) + b[None, :, None, None]
        inv = gamma / jnp.sqrt(var + eps)
        return ((y - mean[None, :, None, None]) * inv[None, :, None, None]
                + beta[None, :, None, None])

    g1 = conv_bn(g, raw["wg"], raw["bg"], raw["gamma_g"], raw["beta_g"],
                 raw["mean_g"], raw["var_g"])
    x1 = conv_bn(x, raw["wx"], raw["bx"], raw["gamma_x"], raw["beta_x"],
                 raw["mean_x"], raw["var_x"])
    h = jnp.maximum(g1 + x1, 0.0)
    p = conv_bn(h, raw["wpsi"], raw["bpsi"], raw["gamma_p"], raw["beta_p"],
                raw["mean_p"], raw["var_p"])
    p = jax.nn.sigmoid(p)
    return x * p


if __name__ == "__main__":
    # Small shapes consistent with the module: batch=2, F_g=F_l=4, F_int=8, 16x16.
    N, F_g, F_l, F_int, H, W = 2, 4, 4, 8, 16, 16

    key = jax.random.PRNGKey(0)
    kg, kx, kp = jax.random.split(key, 3)
    g = jax.random.normal(kg, (N, F_g, H, W), jnp.float32)
    x = jax.random.normal(kx, (N, F_l, H, W), jnp.float32)

    raw = make_raw_params(kp, F_g, F_l, F_int)
    params = fold_params(raw)

    out = attention_block_pallas(g, x, params)
    out = jax.block_until_ready(out)

    ref = attention_block_ref(g, x, raw)
    assert out.shape == (N, F_l, H, W)
    err = float(jnp.max(jnp.abs(out - ref)))
    assert err < 1e-4, f"mismatch vs reference: {err}"

    print("KERNEL_OK")
</pallas_src>

<mosaic_0001>
module attributes {stable_mosaic.version = 11 : i64} {
  func.func @_attention_kernel(%arg0: i32, %arg1: i32, %arg2: memref<1x4x256xf32, #tpu.memory_space<vmem>>, %arg3: memref<1x4x256xf32, #tpu.memory_space<vmem>>, %arg4: memref<8x4xf32, #tpu.memory_space<vmem>>, %arg5: memref<8x4xf32, #tpu.memory_space<vmem>>, %arg6: memref<8x1xf32, #tpu.memory_space<vmem>>, %arg7: memref<1x8xf32, #tpu.memory_space<vmem>>, %arg8: memref<1xf32, #tpu.memory_space<smem>>, %arg9: memref<1x4x256xf32, #tpu.memory_space<vmem>>) attributes {dimension_semantics = [#tpu.dimension_semantics<parallel>, #tpu.dimension_semantics<parallel>], iteration_bounds = array<i64: 2, 1>, scalar_prefetch = 0 : i64, scratch_operands = 0 : i64, tpu.core_type = #tpu.core_type<tc>, window_params = [{transform_indices = @transform_0, window_bounds = array<i64: 1, 4, 256>}, {transform_indices = @transform_1, window_bounds = array<i64: 1, 4, 256>}, {pipeline_mode = #tpu.pipeline_mode<synchronous>, transform_indices = @transform_2, window_bounds = array<i64: 8, 4>}, {pipeline_mode = #tpu.pipeline_mode<synchronous>, transform_indices = @transform_3, window_bounds = array<i64: 8, 4>}, {pipeline_mode = #tpu.pipeline_mode<synchronous>, transform_indices = @transform_4, window_bounds = array<i64: 8, 1>}, {pipeline_mode = #tpu.pipeline_mode<synchronous>, transform_indices = @transform_5, window_bounds = array<i64: 1, 8>}, {transform_indices = @transform_6, window_bounds = array<i64: 1>}, {transform_indices = @transform_7, window_bounds = array<i64: 1, 4, 256>}]} {
    %c0 = arith.constant 0 : index
    %c0_0 = arith.constant 0 : index
    %c0_1 = arith.constant 0 : index
    %0 = vector.load %arg2[%c0, %c0_0, %c0_1] : memref<1x4x256xf32, #tpu.memory_space<vmem>>, vector<1x4x256xf32>
    %1 = vector.shape_cast %0 : vector<1x4x256xf32> to vector<4x256xf32>
    %c0_2 = arith.constant 0 : index
    %c0_3 = arith.constant 0 : index
    %c0_4 = arith.constant 0 : index
    %2 = vector.load %arg3[%c0_2, %c0_3, %c0_4] : memref<1x4x256xf32, #tpu.memory_space<vmem>>, vector<1x4x256xf32>
    %3 = vector.shape_cast %2 : vector<1x4x256xf32> to vector<4x256xf32>
    %c0_5 = arith.constant 0 : index
    %c0_6 = arith.constant 0 : index
    %4 = vector.load %arg4[%c0_5, %c0_6] : memref<8x4xf32, #tpu.memory_space<vmem>>, vector<8x4xf32>
    %cst = arith.constant dense<0.000000e+00> : vector<8x256xf32>
    %5 = tpu.matmul %4, %1, %cst {dimension_numbers = #tpu.dot_dimension_numbers<[1], [0], [0], [1], [0, 0, 1, 1], [], []>} : vector<8x4xf32>, vector<4x256xf32>, vector<8x256xf32> -> vector<8x256xf32>
    %c0_7 = arith.constant 0 : index
    %c0_8 = arith.constant 0 : index
    %6 = vector.load %arg5[%c0_7, %c0_8] : memref<8x4xf32, #tpu.memory_space<vmem>>, vector<8x4xf32>
    %cst_9 = arith.constant dense<0.000000e+00> : vector<8x256xf32>
    %7 = tpu.matmul %6, %3, %cst_9 {dimension_numbers = #tpu.dot_dimension_numbers<[1], [0], [0], [1], [0, 0, 1, 1], [], []>} : vector<8x4xf32>, vector<4x256xf32>, vector<8x256xf32> -> vector<8x256xf32>
    %8 = arith.addf %5, %7 : vector<8x256xf32>
    %c0_10 = arith.constant 0 : index
    %c0_11 = arith.constant 0 : index
    %9 = vector.load %arg6[%c0_10, %c0_11] : memref<8x1xf32, #tpu.memory_space<vmem>>, vector<8x1xf32>
    %10 = vector.broadcast %9 : vector<8x1xf32> to vector<8x256xf32>
    %11 = arith.addf %8, %10 : vector<8x256xf32>
    %cst_12 = arith.constant 0.000000e+00 : f32
    %12 = vector.broadcast %cst_12 : f32 to vector<8x256xf32>
    %13 = arith.maximumf %11, %12 : vector<8x256xf32>
    %c0_13 = arith.constant 0 : index
    %c0_14 = arith.constant 0 : index
    %14 = vector.load %arg7[%c0_13, %c0_14] : memref<1x8xf32, #tpu.memory_space<vmem>>, vector<1x8xf32>
    %cst_15 = arith.constant dense<0.000000e+00> : vector<1x256xf32>
    %15 = tpu.matmul %14, %13, %cst_15 {dimension_numbers = #tpu.dot_dimension_numbers<[1], [0], [0], [1], [0, 0, 1, 1], [], []>} : vector<1x8xf32>, vector<8x256xf32>, vector<1x256xf32> -> vector<1x256xf32>
    %c0_16 = arith.constant 0 : index
    %16 = memref.load %arg8[%c0_16] : memref<1xf32, #tpu.memory_space<smem>>
    %17 = vector.broadcast %16 : f32 to vector<1x256xf32>
    %18 = arith.addf %15, %17 : vector<1x256xf32>
    %cst_17 = arith.constant 0.000000e+00 : f32
    %19 = vector.broadcast %cst_17 : f32 to vector<1x256xf32>
    %20 = arith.subf %19, %18 : vector<1x256xf32>
    %21 = math.exp %20 : vector<1x256xf32>
    %cst_18 = arith.constant 1.000000e+00 : f32
    %22 = vector.broadcast %cst_18 : f32 to vector<1x256xf32>
    %23 = arith.addf %22, %21 : vector<1x256xf32>
    %cst_19 = arith.constant 1.000000e+00 : f32
    %24 = vector.broadcast %cst_19 : f32 to vector<1x256xf32>
    %25 = arith.divf %24, %23 : vector<1x256xf32>
    %26 = vector.broadcast %25 : vector<1x256xf32> to vector<4x256xf32>
    %27 = arith.mulf %3, %26 : vector<4x256xf32>
    %c0_20 = arith.constant 0 : index
    %c0_21 = arith.constant 0 : index
    %c0_22 = arith.constant 0 : index
    %28 = vector.load %arg9[%c0_20, %c0_21, %c0_22] : memref<1x4x256xf32, #tpu.memory_space<vmem>>, vector<1x4x256xf32>
    %29 = vector.shape_cast %28 : vector<1x4x256xf32> to vector<4x256xf32>
    %30 = vector.shape_cast %27 : vector<4x256xf32> to vector<1x4x256xf32>
    tpu.vector_store %arg9[%c0_20, %c0_21, %c0_22], %30 {strides = array<i32>} : memref<1x4x256xf32, #tpu.memory_space<vmem>>, vector<1x4x256xf32>,
    return
  }
  func.func @transform_0(%arg0: i32, %arg1: i32) -> (i32, i32, i32) {
    %c0_i32 = arith.constant 0 : i32
    %c0_i32_0 = arith.constant 0 : i32
    return %arg0, %c0_i32, %arg1 : i32, i32, i32
  }
  func.func @transform_1(%arg0: i32, %arg1: i32) -> (i32, i32, i32) {
    %c0_i32 = arith.constant 0 : i32
    %c0_i32_0 = arith.constant 0 : i32
    return %arg0, %c0_i32, %arg1 : i32, i32, i32
  }
  func.func @transform_2(%arg0: i32, %arg1: i32) -> (i32, i32) {
    %c0_i32 = arith.constant 0 : i32
    %c0_i32_0 = arith.constant 0 : i32
    %c0_i32_1 = arith.constant 0 : i32
    return %c0_i32, %c0_i32_0 : i32, i32
  }
  func.func @transform_3(%arg0: i32, %arg1: i32) -> (i32, i32) {
    %c0_i32 = arith.constant 0 : i32
    %c0_i32_0 = arith.constant 0 : i32
    %c0_i32_1 = arith.constant 0 : i32
    return %c0_i32, %c0_i32_0 : i32, i32
  }
  func.func @transform_4(%arg0: i32, %arg1: i32) -> (i32, i32) {
    %c0_i32 = arith.constant 0 : i32
    %c0_i32_0 = arith.constant 0 : i32
    %c0_i32_1 = arith.constant 0 : i32
    return %c0_i32, %c0_i32_0 : i32, i32
  }
  func.func @transform_5(%arg0: i32, %arg1: i32) -> (i32, i32) {
    %c0_i32 = arith.constant 0 : i32
    %c0_i32_0 = arith.constant 0 : i32
    %c0_i32_1 = arith.constant 0 : i32
    return %c0_i32, %c0_i32_0 : i32, i32
  }
  func.func @transform_6(%arg0: i32, %arg1: i32) -> i32 {
    %c0_i32 = arith.constant 0 : i32
    %c0_i32_0 = arith.constant 0 : i32
    return %c0_i32 : i32
  }
  func.func @transform_7(%arg0: i32, %arg1: i32) -> (i32, i32, i32) {
    %c0_i32 = arith.constant 0 : i32
    %c0_i32_0 = arith.constant 0 : i32
    return %arg0, %c0_i32, %arg1 : i32, i32, i32
  }
}

</mosaic_0001>

<bundles_post_ra>
// kernel: tpu_custom_call.1
= control target key start
LH: loop header
LB: loop body
LE: loop exit
PB: predicated region body
PF: predicated region fallthrough
CT: control target
= control target key end

     0   :  { %s1067_s0 = inlined_call_operand.vmem [shape: f32[2,4,256], index: 0, kind: input, shape index: {}]   ;;  %s1068_s1 = inlined_call_operand.vmem [shape: f32[2,4,256], index: 1, kind: input, shape index: {}]   ;;  %s1069_s2 = inlined_call_operand.vmem [shape: f32[8,4], index: 2, kind: input, shape index: {}]   ;;  %s1070_s3 = inlined_call_operand.vmem [shape: f32[8,4], index: 3, kind: input, shape index: {}]   ;;  %s1071_s4 = inlined_call_operand.vmem [shape: f32[8,1], index: 4, kind: input, shape index: {}]   ;;  %s1072_s5 = inlined_call_operand.vmem [shape: f32[1,8], index: 5, kind: input, shape index: {}]   ;;  %s1073_s6 = inlined_call_operand.<no memory space> [shape: f32[1], index: 6, kind: input, shape index: {}]   ;;  %s1074_s7 = inlined_call_operand.hbm [shape: f32[2,4,256], index: 7, kind: output, shape index: {}]  }
   0x1   :  { %12 = sst [smem:[#allocation2]] %s1073_s6 }
   0x2   :  { %13 = vsyncpa [#allocation4], 0 }
   0x3   :  { %15 = vsyncpa [#allocation4 + $0x1], 0  ;;  %s953_s26 = smov 0   ;;  %s955_s27 = smov 0  }
   0x4   :  { %s957_s28 = smov 0   ;;  %s959_s29 = smov 0  }
   0x5   :  { %s961_s30 = smov 0   ;;  %s963_s8 = smov 0  }
   0x6 LB: > { %s736_s6 = sadd.s32 4294967295, %s905_s8   ;;  %s737_s9 = sadd.s32 4294967294, %s905_s8   ;;  %s905_s8 = sphi %s963_s8, %s21_s8   ;;  %s901_s30 = sphi %s961_s30, %s1081_s30   ;;  %s897_s29 = sphi %s959_s29, %s1080_s29   ;;  %s893_s28 = sphi %s957_s28, %s1079_s28   ;;  %s889_s27 = sphi %s955_s27, %s1078_s27   ;;  %s885_s26 = sphi %s953_s26, %s1077_s26  }
   0x7   : > { %s33_s10 = sadd.s32 1, %s901_s30  ;;  %s203_s11 = sadd.s32 1, %s893_s28 }
   0x8   : > { %p35_p0 = scmp.ge.s32.totalorder %s33_s10, 2  ;;  %p213_p1 = scmp.ne.s32.totalorder %s893_s28, %s889_s27 }
   0x9   : > { %p214_p2 = scmp.eq.s32.totalorder %s736_s6, 1  ;;  %p219_p3 = scmp.ne.s32.totalorder %s889_s27, %s885_s26 }
   0xa   : > { %s1083_s10 = smov (%p35_p0, %s33_s10), 0  ;;  %p220_p5 = scmp.eq.s32.totalorder %s737_s9, 1 }
   0xb   : > { %p993_p4 = por %p214_p2, %p213_p1  ;;  %s198_s13 = ssub.s32 %s901_s30, %s1083_s10 }
   0xc   : > { %p740_p6 = scmp.ge.s32.totalorder %s905_s8, 1  ;;  %p201_p7 = scmp.eq.s32.totalorder %s198_s13, 0 }
   0xd   : > { %p1000_p8 = por %p220_p5, %p219_p3  ;;  %p279_p9 = scmp.lt.s32.totalorder %s905_s8, 3 }
   0xe   : > { %s1006_s15 = scalar_select %p201_p7, %s893_s28, %s203_s11  }
   0xf   : > { %p280_p10 = pnand %p740_p6, %p279_p9 }
  0x10   : > { %p325_p11 = scmp.lt.s32.totalorder (!%p280_p10), %s897_s29, 1  ;;  %s760_s21 = sshll.u32 (!%p280_p10), %s897_s29, 7 }
  0x11   : > { %283 = sbr.rel (%p280_p10) target bundleno = 485 (0x1e5), region = 48  ;;  %s640_s6 = scalar_lea.hbm (!%p280_p10), %s1074_s7, %s760_s21 }
  0x12   : > { %s909_s13 = smov (!%p280_p10), [#allocation3]  }
  0x13   : > { %s833_s16 = sshll.u32 (!%p280_p10), %s909_s13, 4  ;;  %s834_s16 = int_to_ptr.vmem [resolvable:$false] %s833_s16 }
  0x16   : > { %v907_v0 = vmov 0.0   ;;  %v511_v1 = vld [vmem:[%s1071_s4] sm:$0xff]  ;;  %s326_s18 = scalar_select %p325_p11, %s897_s29, 1  ;;  %v908_v2 = vmov 0   ;;  %vm355_vm0 = vcmask 1043456   ;;  %vm351_vm1 = vcmask 31744  }
  0x17   : > { %424 = vmatprep.mubr.f32.mxu0 %v907_v0  ;;  %504 = vmatprep.mubr.f32.mxu1 %v907_v0  ;;  %v348_v7 = vld [vmem:[%s1070_s3] sm:$0xff]  ;;  %vm524_vm2 = vcmask 64512   ;;  %v611_v34 = vlaneseq  ;;  %s835_s29 = scalar_lea.vmem %s834_s16, 256 }
  0x18   : > { %818 = vset.pattern.permute.xlu0 %v908_v2  ;;  %s758_s19 = sshll.u32 %s326_s18, 3  ;;  %v347_v8 = vld [vmem:[%s1069_s2] sm:$0xff]  ;;  %s522_s18 = sld [smem:[#allocation2]] }
  0x19   : > { %514 = vperm.xlu0 %818, %v511_v1   ;;  %s342_s22 = scalar_lea.vmem %s1068_s1, %s758_s19  ;;  %s332_s25 = scalar_lea.vmem %s1067_s0, %s758_s19  ;;  %v521_v20 = vld [vmem:[%s1072_s5] sm:$0x1]  ;;  %v612_v35 = vshrl.u32 %v611_v34, 7 }
  0x1a   : > { %v346_v3 = vld [vmem:[%s342_s22] sm:$0xff]  ;;  %s321_s19 = sand.u32 1, %s889_s27  }
  0x1b   : > { %v345_v4 = vld [vmem:[%s332_s25] sm:$0xff]  ;;  %v350_v5 = vcombine.high %v346_v3, %v346_v3  ;;  %s741_s20 = sshll.u32 %s321_s19, 3  ;;  %v613_v36 = vsub.s32 0, %v612_v35  ;;  %s626_s9 = scalar_lea.sflag [#allocation4], %s321_s19 }
  0x1c   : > { %v432_v6 = vcombine.high %v345_v4, %v345_v4  ;;  %s323_s22 = scalar_lea.vmem [#allocation3], %s741_s20 }
  0x1d   : > { %746 = vmatprep.subr.msk.mxu0 %vm355_vm0, %v350_v5  ;;  %s642_s23 = sshll.u32 %s323_s22, 4  ;;  %s643_s23 = int_to_ptr.vmem [resolvable:$true] %s642_s23 }
  0x1e   : > { %749 = vmatprep.subr.msk.mxu1 %vm355_vm0, %v432_v6  ;;  %747 = vmatpush1.msk.msra.mxu0 %vm355_vm0, %v346_v3  ;;  %v523_v21 = vstv %s522_s18  ;;  %s829_s11 = scalar_lea.vmem %s643_s23, 128  ;;  %p836_p1 = scmp.lt.s32.totalorder %s643_s23, %s834_s16 }
  0x1f   : > { %750 = vmatpush1.msk.msra.mxu1 %vm355_vm0, %v345_v4  ;;  %748 = vmatmul.mubr.msk.f32.vlgmr.msra.gmra.mxu0 %vm351_vm1, %v348_v7  ;;  %p830_p12 = scmp.ne.s32.totalorder %s643_s23, %s829_s11  ;;  %p837_p2 = scmp.lt.s32.totalorder %s835_s29, %s829_s11 }
  0x20   : > { %751 = vmatmul.mubr.msk.f32.vlgmr.msra.gmra.mxu1 %vm351_vm1, %v347_v8  ;;  %592 = vmatprep.mubr.f32.mxu0 %v907_v0 }
  0x21   : > { %p831_p13 = pnand %p830_p12, %p993_p4  ;;  %p838_p3 = por %p837_p2, %p836_p1 }
  0x23   : > { %p832_p0 = pneg %p831_p13 }
  0x25   : > { %p839_p5 = pnand %p838_p3, %p832_p0 }
  0x94   : > { %v515_v12 = vpop.permute.xlu0 %514 }
  0xdf   : > { %v426_v9 = vpop.f32.mrf.mxu0 }
  0xe0   : > { %v506_v10 = vpop.f32.mrf.mxu1 }
  0xe1   : > { %v507_v11 = vadd.f32 %v506_v10, %v426_v9  ;;  %v428_v13 = vpop.f32.mrf.mxu0 }
  0xe2   : > { %v508_v14 = vpop.f32.mrf.mxu1 }
  0xe3   : > { %v509_v15 = vadd.f32 %v508_v14, %v428_v13  ;;  %v517_v16 = vadd.f32 %v515_v12, %v507_v11 }
  0xe5   : > { %v518_v17 = vadd.f32 %v515_v12, %v509_v15  ;;  %v519_v19 = vmax.f32 %v517_v16, 0.0 }
  0xe7   : > { %v520_v18 = vmax.f32 %v518_v17, 0.0 }
  0xe9   : > { %558 = vmatprep.subr.mxu0 %v520_v18 }
  0xea   : > { %559 = vmatpush1.msra.mxu0 %v519_v19 }
  0xeb   : > { %752 = vmatmul.mubr.msk.f32.vlgmr.msra.gmra.mxu0 %vm524_vm2, %v521_v20 }
 0x1ab   : > { %v594_v22 = vpop.f32.mrf.mxu0 }
 0x1ac   : > { %v595_v23 = vadd.f32 %v594_v22, %v523_v21 }
 0x1ad   : > { %v596_v24 = vpop.f32.mrf.mxu0 }
 0x1ae   : > { %v599_v25 = vsub.f32 0.0, %v595_v23  ;;  %v597_v26 = vadd.f32 %v596_v24, %v523_v21 }
 0x1b0   : > { %v601_v27 = vmul.f32 1.442695, %v599_v25  ;;  %v600_v28 = vsub.f32 0.0, %v597_v26 }
 0x1b2   : > { %821 = vpow2.f32 %v601_v27  ;;  %v603_v29 = vmul.f32 1.442695, %v600_v28 }
 0x1b4   : > { %823 = vpow2.f32 %v603_v29 }
 0x1bf   : > { %v822_v30 = vpop.eup %821 }
 0x1c0   : > { %v605_v31 = vadd.f32 1.0, %v822_v30 }
 0x1c1   : > { %v824_v32 = vpop.eup %823 }
 0x1c2   : > { %825 = vrcp.f32 %v605_v31  ;;  %v606_v33 = vadd.f32 1.0, %v824_v32 }
 0x1c4   : > { %827 = vrcp.f32 %v606_v33 }
 0x1cf   : > { %v826_v37 = vpop.eup %825 }
 0x1d0   : > { %v614_v39 = vrot.slane %v826_v37, %v613_v36 }
 0x1d1   : > { %v828_v38 = vpop.eup %827 }
 0x1d2   : > { %v618_v40 = vrot.slane %v828_v38, %v613_v36 }
 0x1d4   : > { %v621_v41 = vcombine.low %v614_v39, %v618_v40 }
 0x1d6   : > { %v623_v42 = vmul.f32 %v621_v41, %v346_v3 }
 0x1d8   : > { %624 = vst [vmem:[%s323_s22] sm:$0xff] %v623_v42 }
 0x1d9   : > { %842 = shalt.err (!%p839_p5)
}
 0x1da   : > { %s843_s17 = scalar_lea.hbm %s640_s6, 128  ;;  %s847_s20 = scalar_lea.hbm %s1074_s7, 256 }
 0x1db   : > { %p844_p6 = scmp.ne.s32.totalorder %s640_s6, %s843_s17  ;;  %p848_p10 = scmp.lt.s32.totalorder %s640_s6, %s1074_s7 }
 0x1dc   : > { %p849_p11 = scmp.lt.s32.totalorder %s847_s20, %s843_s17 }
 0x1dd   : > { %p845_p7 = pnand %p844_p6, %p993_p4 }
 0x1de   : > { %p850_p12 = por %p849_p11, %p848_p10 }
 0x1df   : > { %p846_p9 = pneg %p845_p7 }
 0x1e1   : > { %p851_p13 = pnand %p850_p12, %p846_p9 }
 0x1e3   : > { %854 = shalt.err (!%p851_p13)
}
 0x1e4   : > { %761 = dma.vmem_to_hbm [thread:$0]  (%p993_p4), %s643_s23, 128, %s640_s6, %s626_s9  }
 0x1e5 PF: > { %p767_p0 = scmp.ge.s32.totalorder %s905_s8, 2  ;;  %s654_s24 = sand.u32 1, %s885_s26  }
 0x1e6   : > { %s655_s25 = scalar_lea.sflag [#allocation4], %s654_s24 }
 0x1e7   : > { %p764_p1 = pnand %p767_p0, %p1000_p8 }
 0x1e9   : > { %p765_p2 = pneg %p764_p1 }
 0x1eb   : > { %880 = dma.done.wait (%p765_p2), %s655_s25, 128  }
 0x1ec   : > { %882 = vsyncadd (%p765_p2), %s655_s25, 4294967168  ;;  %s21_s8 = sadd.s32 1, %s905_s8   ;;  %s1077_s26 = smov %s889_s27 }
 0x1ed   : > { %p18_p3 = scmp.ge.s32.totalorder %s21_s8, 4   ;;  %s1078_s27 = smov %s893_s28 }
 0x1ee   : > { %s1079_s28 = smov %s1006_s15  ;;  %s1080_s29 = smov %s901_s30 }
 0x1ef   : > { %s1081_s30 = smov %s1083_s10  ;;  %20 = sbr.rel (!%p18_p3) target bundleno = 6 (0x6), region = 86 }
 0x1f4   :  { %660 = vsyncpa [#allocation4], 1 }
 0x1f5   :  { %662 = vsyncpa [#allocation4 + $0x1], 1 }

</bundles_post_ra>
